<compile_context>
chip_gen: v5e
topology: v5e:2x2
jax: 0.10.0
libtpu: 0.0.40
codegen_flags: <defaults>
</compile_context>

<pallas_src>
import functools

import jax
import jax.numpy as jnp
from jax.experimental import pallas as pl
from jax.experimental.pallas import tpu as pltpu

N_FEATURES = 65
N_HID1 = 50
N_HID2 = 20
N_CLASSES = 2
BN_EPS = 1e-5

H1_PAD = 128   # lane-dense padding of hidden dims
H2_PAD = 128
TB_DEFAULT = 2048  # batch tile (multiple of 8); big enough to amortize per-step overhead


def _round_up(n, m):
    return ((n + m - 1) // m) * m


# --------------------------------------------------------------------------- #
# Kernel
# --------------------------------------------------------------------------- #
def iqm_mlp_kernel(x_ref, w1_ref, b1_ref, w2_ref, b2_ref, w3_ref, b3_ref, o_ref):
    # ---- Linear(65 -> 50[pad 128]) + ReLU ---------------------------------
    x = x_ref[...]                                            # (TB, 65) bf16
    h1 = jnp.dot(x, w1_ref[...], preferred_element_type=jnp.float32) + b1_ref[...]
    h1 = jnp.maximum(h1, 0.0)
    # Dropout(0.25): identity in eval mode.
    # TODO(synk): training-mode dropout (random mask) not reproduced here.

    # ---- Linear(50 -> 20[pad 128]) with folded BatchNorm1d, + ReLU --------
    h2 = jnp.dot(h1.astype(w2_ref.dtype), w2_ref[...],
                 preferred_element_type=jnp.float32) + b2_ref[...]
    h2 = jnp.maximum(h2, 0.0)
    # Dropout(0.25): identity in eval mode.

    # ---- Linear(20 -> n_classes) ------------------------------------------
    out = jnp.dot(h2.astype(w3_ref.dtype), w3_ref[...],
                  preferred_element_type=jnp.float32) + b3_ref[...]
    o_ref[...] = out.astype(o_ref.dtype)


# --------------------------------------------------------------------------- #
# Wrapper
# --------------------------------------------------------------------------- #
@functools.partial(jax.jit, static_argnames=("tb",))
def iqm_mlp_forward(x, prepared_params, tb=TB_DEFAULT):
    """x: (B, 65) float32 -> (B, n_classes) float32."""
    B = x.shape[0]
    w1, b1, w2, b2, w3, b3 = prepared_params

    TB = min(tb, _round_up(B, 8))          # batch tile, multiple of 8
    B_pad = _round_up(B, TB)
    if B_pad != B:
        x = jnp.pad(x, ((0, B_pad - B), (0, 0)))
    x = x.astype(jnp.bfloat16)             # halve streamed HBM bytes for x
    grid = (B_pad // TB,)

    x_spec = pl.BlockSpec((TB, N_FEATURES), lambda i: (i, 0))
    out_spec = pl.BlockSpec((TB, N_CLASSES), lambda i: (i, 0))
    # Weights/biases: block index constant across the grid -> stay resident,
    # no re-DMA per batch tile.
    resident = lambda shape: pl.BlockSpec(shape, lambda i: (0, 0))

    flops = 2 * B_pad * (N_FEATURES * N_HID1 + N_HID1 * N_HID2 + N_HID2 * N_CLASSES)
    weight_bytes = (w1.size + w2.size + w3.size) * 2 + (b1.size + b2.size + b3.size) * 4
    bytes_accessed = B_pad * N_FEATURES * 2 + B_pad * N_CLASSES * 4 + weight_bytes

    out = pl.pallas_call(
        iqm_mlp_kernel,
        out_shape=jax.ShapeDtypeStruct((B_pad, N_CLASSES), jnp.float32),
        grid=grid,
        in_specs=[
            x_spec,
            resident((N_FEATURES, H1_PAD)), resident((1, H1_PAD)),
            resident((H1_PAD, H2_PAD)),     resident((1, H2_PAD)),
            resident((H2_PAD, N_CLASSES)),  resident((1, N_CLASSES)),
        ],
        out_specs=out_spec,
        compiler_params=pltpu.CompilerParams(
            dimension_semantics=("parallel",),
        ),
        cost_estimate=pl.CostEstimate(
            flops=flops, bytes_accessed=bytes_accessed, transcendentals=0),
    )(x, w1, b1, w2, b2, w3, b3)

    return out[:B]


# --------------------------------------------------------------------------- #
# Parameter construction (matches IQMMLP.__init__) + folding/padding
# --------------------------------------------------------------------------- #
def init_params(key):
    """Raw params matching IQMMLP.__init__:
       Linear weights xavier_normal_, biases 0; BatchNorm1d gamma=1, beta=0,
       running_mean=0, running_var=1 (eval mode)."""
    def xavier_normal(k, fan_in, fan_out):
        std = (2.0 / (fan_in + fan_out)) ** 0.5
        # stored as (in, out) so the kernel computes x @ W
        return jax.random.normal(k, (fan_in, fan_out), dtype=jnp.float32) * std

    k1, k2, k3 = jax.random.split(key, 3)
    w1 = xavier_normal(k1, N_FEATURES, N_HID1)
    b1 = jnp.zeros((N_HID1,), jnp.float32)
    w2 = xavier_normal(k2, N_HID1, N_HID2)
    b2 = jnp.zeros((N_HID2,), jnp.float32)
    w3 = xavier_normal(k3, N_HID2, N_CLASSES)
    b3 = jnp.zeros((N_CLASSES,), jnp.float32)

    gamma = jnp.ones((N_HID2,), jnp.float32)
    beta = jnp.zeros((N_HID2,), jnp.float32)
    running_mean = jnp.zeros((N_HID2,), jnp.float32)
    running_var = jnp.ones((N_HID2,), jnp.float32)
    return (w1, b1, w2, b2, gamma, beta, running_mean, running_var, w3, b3)


def prepare_params(raw):
    """Fold eval-mode BatchNorm1d into W2/b2, zero-pad hidden dims to 128,
       cast matmul weights to bf16 (biases stay f32)."""
    w1, b1, w2, b2, gamma, beta, running_mean, running_var, w3, b3 = raw

    # BN eval fold: y = (x - mean) / sqrt(var + eps) * gamma + beta
    bn_scale = gamma / jnp.sqrt(running_var + BN_EPS)          # (20,)
    bn_bias = beta - running_mean * bn_scale                   # (20,)
    w2f = w2 * bn_scale[None, :]
    b2f = b2 * bn_scale + bn_bias
    # TODO(synk): training-mode BatchNorm (batch statistics) not reproduced here.

    def pad2(w, rows, cols):
        return jnp.pad(w, ((0, rows - w.shape[0]), (0, cols - w.shape[1])))

    def pad1(b, cols):
        return jnp.pad(b, (0, cols - b.shape[0]))[None, :]

    w1p = pad2(w1, N_FEATURES, H1_PAD).astype(jnp.bfloat16)    # (65, 128)
    b1p = pad1(b1, H1_PAD)                                     # (1, 128) f32
    w2p = pad2(w2f, H1_PAD, H2_PAD).astype(jnp.bfloat16)       # (128, 128)
    b2p = pad1(b2f, H2_PAD)                                    # (1, 128) f32
    w3p = pad2(w3, H2_PAD, N_CLASSES).astype(jnp.bfloat16)     # (128, 2)
    b3p = b3[None, :]                                          # (1, 2) f32
    return (w1p, b1p, w2p, b2p, w3p, b3p)


def reference_forward(x, prepared_params):
    """Pure-JAX reference with the exact same numerics (bf16 operands,
       f32 accumulation, folded BN, zero padding)."""
    w1, b1, w2, b2, w3, b3 = prepared_params
    xb = x.astype(jnp.bfloat16)
    h1 = jnp.maximum(jnp.dot(xb, w1, preferred_element_type=jnp.float32) + b1, 0.0)
    h2 = jnp.maximum(
        jnp.dot(h1.astype(jnp.bfloat16), w2, preferred_element_type=jnp.float32) + b2, 0.0)
    return jnp.dot(h2.astype(jnp.bfloat16), w3, preferred_element_type=jnp.float32) + b3


if __name__ == "__main__":
    key = jax.random.PRNGKey(0)
    kx, kp = jax.random.split(key)

    B = 8
    x = jax.random.normal(kx, (B, N_FEATURES), dtype=jnp.float32)

    raw = init_params(kp)
    params = prepare_params(raw)

    out = iqm_mlp_forward(x, params)
    out = jax.block_until_ready(out)

    ref = reference_forward(x, params)
    assert out.shape == (B, N_CLASSES)
    assert jnp.allclose(out, ref, atol=1e-3, rtol=1e-3), "mismatch vs reference"

    print("KERNEL_OK")
</pallas_src>

<mosaic_0001>
module attributes {stable_mosaic.version = 11 : i64} {
  func.func @iqm_mlp_kernel(%arg0: i32, %arg1: memref<8x65xbf16, #tpu.memory_space<vmem>>, %arg2: memref<65x128xbf16, #tpu.memory_space<vmem>>, %arg3: memref<1x128xf32, #tpu.memory_space<vmem>>, %arg4: memref<128x128xbf16, #tpu.memory_space<vmem>>, %arg5: memref<1x128xf32, #tpu.memory_space<vmem>>, %arg6: memref<128x2xbf16, #tpu.memory_space<vmem>>, %arg7: memref<1x2xf32, #tpu.memory_space<vmem>>, %arg8: memref<8x2xf32, #tpu.memory_space<vmem>>) attributes {dimension_semantics = [#tpu.dimension_semantics<parallel>], iteration_bounds = array<i64: 1>, scalar_prefetch = 0 : i64, scratch_operands = 0 : i64, tpu.core_type = #tpu.core_type<tc>, window_params = [{transform_indices = @transform_0, window_bounds = array<i64: 8, 65>}, {pipeline_mode = #tpu.pipeline_mode<synchronous>, transform_indices = @transform_1, window_bounds = array<i64: 65, 128>}, {pipeline_mode = #tpu.pipeline_mode<synchronous>, transform_indices = @transform_2, window_bounds = array<i64: 1, 128>}, {pipeline_mode = #tpu.pipeline_mode<synchronous>, transform_indices = @transform_3, window_bounds = array<i64: 128, 128>}, {pipeline_mode = #tpu.pipeline_mode<synchronous>, transform_indices = @transform_4, window_bounds = array<i64: 1, 128>}, {pipeline_mode = #tpu.pipeline_mode<synchronous>, transform_indices = @transform_5, window_bounds = array<i64: 128, 2>}, {pipeline_mode = #tpu.pipeline_mode<synchronous>, transform_indices = @transform_6, window_bounds = array<i64: 1, 2>}, {transform_indices = @transform_7, window_bounds = array<i64: 8, 2>}]} {
    %c0 = arith.constant 0 : index
    %c0_0 = arith.constant 0 : index
    %0 = vector.load %arg1[%c0, %c0_0] : memref<8x65xbf16, #tpu.memory_space<vmem>>, vector<8x65xbf16>
    %c0_1 = arith.constant 0 : index
    %c0_2 = arith.constant 0 : index
    %1 = vector.load %arg2[%c0_1, %c0_2] : memref<65x128xbf16, #tpu.memory_space<vmem>>, vector<65x128xbf16>
    %cst = arith.constant dense<0.000000e+00> : vector<8x128xf32>
    %2 = tpu.matmul %0, %1, %cst {dimension_numbers = #tpu.dot_dimension_numbers<[1], [0], [0], [1], [0, 0, 1, 1], [], []>} : vector<8x65xbf16>, vector<65x128xbf16>, vector<8x128xf32> -> vector<8x128xf32>
    %c0_3 = arith.constant 0 : index
    %c0_4 = arith.constant 0 : index
    %3 = vector.load %arg3[%c0_3, %c0_4] : memref<1x128xf32, #tpu.memory_space<vmem>>, vector<1x128xf32>
    %4 = vector.broadcast %3 : vector<1x128xf32> to vector<8x128xf32>
    %5 = arith.addf %2, %4 : vector<8x128xf32>
    %cst_5 = arith.constant 0.000000e+00 : f32
    %6 = vector.broadcast %cst_5 : f32 to vector<8x128xf32>
    %7 = arith.maximumf %5, %6 : vector<8x128xf32>
    %8 = arith.truncf %7 : vector<8x128xf32> to vector<8x128xbf16>
    %c0_6 = arith.constant 0 : index
    %c0_7 = arith.constant 0 : index
    %9 = vector.load %arg4[%c0_6, %c0_7] : memref<128x128xbf16, #tpu.memory_space<vmem>>, vector<128x128xbf16>
    %cst_8 = arith.constant dense<0.000000e+00> : vector<8x128xf32>
    %10 = tpu.matmul %8, %9, %cst_8 {dimension_numbers = #tpu.dot_dimension_numbers<[1], [0], [0], [1], [0, 0, 1, 1], [], []>} : vector<8x128xbf16>, vector<128x128xbf16>, vector<8x128xf32> -> vector<8x128xf32>
    %c0_9 = arith.constant 0 : index
    %c0_10 = arith.constant 0 : index
    %11 = vector.load %arg5[%c0_9, %c0_10] : memref<1x128xf32, #tpu.memory_space<vmem>>, vector<1x128xf32>
    %12 = vector.broadcast %11 : vector<1x128xf32> to vector<8x128xf32>
    %13 = arith.addf %10, %12 : vector<8x128xf32>
    %cst_11 = arith.constant 0.000000e+00 : f32
    %14 = vector.broadcast %cst_11 : f32 to vector<8x128xf32>
    %15 = arith.maximumf %13, %14 : vector<8x128xf32>
    %16 = arith.truncf %15 : vector<8x128xf32> to vector<8x128xbf16>
    %c0_12 = arith.constant 0 : index
    %c0_13 = arith.constant 0 : index
    %17 = vector.load %arg6[%c0_12, %c0_13] : memref<128x2xbf16, #tpu.memory_space<vmem>>, vector<128x2xbf16>
    %cst_14 = arith.constant dense<0.000000e+00> : vector<8x2xf32>
    %18 = tpu.matmul %16, %17, %cst_14 {dimension_numbers = #tpu.dot_dimension_numbers<[1], [0], [0], [1], [0, 0, 1, 1], [], []>} : vector<8x128xbf16>, vector<128x2xbf16>, vector<8x2xf32> -> vector<8x2xf32>
    %c0_15 = arith.constant 0 : index
    %c0_16 = arith.constant 0 : index
    %19 = vector.load %arg7[%c0_15, %c0_16] : memref<1x2xf32, #tpu.memory_space<vmem>>, vector<1x2xf32>
    %20 = vector.broadcast %19 : vector<1x2xf32> to vector<8x2xf32>
    %21 = arith.addf %18, %20 : vector<8x2xf32>
    %c0_17 = arith.constant 0 : index
    %c0_18 = arith.constant 0 : index
    %22 = vector.load %arg8[%c0_17, %c0_18] : memref<8x2xf32, #tpu.memory_space<vmem>>, vector<8x2xf32>
    tpu.vector_store %arg8[%c0_17, %c0_18], %21 {strides = array<i32>} : memref<8x2xf32, #tpu.memory_space<vmem>>, vector<8x2xf32>,
    return
  }
  func.func @transform_0(%arg0: i32) -> (i32, i32) {
    %c0_i32 = arith.constant 0 : i32
    %c0_i32_0 = arith.constant 0 : i32
    return %arg0, %c0_i32 : i32, i32
  }
  func.func @transform_1(%arg0: i32) -> (i32, i32) {
    %c0_i32 = arith.constant 0 : i32
    %c0_i32_0 = arith.constant 0 : i32
    %c0_i32_1 = arith.constant 0 : i32
    return %c0_i32, %c0_i32_0 : i32, i32
  }
  func.func @transform_2(%arg0: i32) -> (i32, i32) {
    %c0_i32 = arith.constant 0 : i32
    %c0_i32_0 = arith.constant 0 : i32
    %c0_i32_1 = arith.constant 0 : i32
    return %c0_i32, %c0_i32_0 : i32, i32
  }
  func.func @transform_3(%arg0: i32) -> (i32, i32) {
    %c0_i32 = arith.constant 0 : i32
    %c0_i32_0 = arith.constant 0 : i32
    %c0_i32_1 = arith.constant 0 : i32
    return %c0_i32, %c0_i32_0 : i32, i32
  }
  func.func @transform_4(%arg0: i32) -> (i32, i32) {
    %c0_i32 = arith.constant 0 : i32
    %c0_i32_0 = arith.constant 0 : i32
    %c0_i32_1 = arith.constant 0 : i32
    return %c0_i32, %c0_i32_0 : i32, i32
  }
  func.func @transform_5(%arg0: i32) -> (i32, i32) {
    %c0_i32 = arith.constant 0 : i32
    %c0_i32_0 = arith.constant 0 : i32
    %c0_i32_1 = arith.constant 0 : i32
    return %c0_i32, %c0_i32_0 : i32, i32
  }
  func.func @transform_6(%arg0: i32) -> (i32, i32) {
    %c0_i32 = arith.constant 0 : i32
    %c0_i32_0 = arith.constant 0 : i32
    %c0_i32_1 = arith.constant 0 : i32
    return %c0_i32, %c0_i32_0 : i32, i32
  }
  func.func @transform_7(%arg0: i32) -> (i32, i32) {
    %c0_i32 = arith.constant 0 : i32
    %c0_i32_0 = arith.constant 0 : i32
    return %arg0, %c0_i32 : i32, i32
  }
}

</mosaic_0001>

<bundles_post_ra>
// kernel: iqm_mlp_forward.1
= control target key start
LH: loop header
LB: loop body
LE: loop exit
PB: predicated region body
PF: predicated region fallthrough
CT: control target
= control target key end

     0   :  { %12 = vsyncpa [#allocation3], 0  ;;  %s414_s27 = smov [#allocation2]   ;;  %s415_s29 = smov 64   ;;  %s524_s0 = inlined_call_operand.vmem [shape: bf16[8,65], index: 0, kind: input, shape index: {}]   ;;  %s525_s1 = inlined_call_operand.hbm [shape: bf16[65,128], index: 1, kind: input, shape index: {}]   ;;  %s526_s2 = inlined_call_operand.vmem [shape: f32[1,128], index: 2, kind: input, shape index: {}]   ;;  %s527_s3 = inlined_call_operand.vmem [shape: bf16[128,128], index: 3, kind: input, shape index: {}]   ;;  %s528_s4 = inlined_call_operand.vmem [shape: f32[1,128], index: 4, kind: input, shape index: {}]   ;;  %s529_s5 = inlined_call_operand.vmem [shape: bf16[128,2], index: 5, kind: input, shape index: {}]   ;;  %s530_s6 = inlined_call_operand.vmem [shape: f32[1,2], index: 6, kind: input, shape index: {}]   ;;  %s531_s7 = inlined_call_operand.vmem [shape: f32[8,2], index: 7, kind: output, shape index: {}]  }
   0x1   :  { %s19_s26 = sshll.u32 %s525_s1, 4  ;;  %s21_s28 = sshll.u32 %s414_s27, 4  ;;  %s20_s26 = int_to_ptr.hbm [resolvable:$true] %s19_s26  ;;  %s22_s28 = int_to_ptr.vmem [resolvable:$true] %s21_s28 }
   0x2   :  { %s416_s30 = smov 4  }
   0x3   :  { %27 = dma.hbm_to_vmem [thread:$0]  %s20_s26, 576, %s22_s28, [#allocation3], %s415_s29, %s415_s29, %s416_s30  }
   0x4   :  { %412 = dma.done.wait [#allocation3], 576  }
   0x5   :  { %413 = vsyncadd [#allocation3], 4294966720  ;;  %vm88_vm0 = vcmask 1040384   ;;  %v52_v0 = vld [vmem:[#allocation2 + $0x20] sm:$0x1]  ;;  %v417_v2 = vmov 0  }
   0x6   :  { %v74_v1 = vunpack.c.l.b16 %v52_v0  ;;  %v90_v3 = vsel %vm88_vm0, 65535, %v417_v2  ;;  %v372_v4 = vld [vmem:[%s527_s3 + $0x38] sm:$0xff]  ;;  %v371_v6 = vld [vmem:[%s527_s3 + $0x30] sm:$0xff]  ;;  %v370_v9 = vld [vmem:[%s527_s3 + $0x28] sm:$0xff]  ;;  %vm84_vm1 = vcmask 531456   ;;  %vm273_vm2 = vcmask 15360  }
   0x7   :  { %177 = vmatpush.bf16.msra.mxu1 %v372_v4  ;;  %v364_v8 = vld [vmem:[#allocation2 + $0x18] sm:$0xff]  ;;  %v363_v10 = vld [vmem:[#allocation2 + $0x10] sm:$0xff]  ;;  %v369_v11 = vld [vmem:[%s527_s3 + $0x20] sm:$0xff] }
   0x8   :  { %v79_v5 = vpack.c.b16 %v74_v1, %v74_v1  ;;  %v362_v12 = vld [vmem:[#allocation2 + $0x8] sm:$0xff]  ;;  %v368_v13 = vld [vmem:[%s527_s3 + $0x18] sm:$0xff]  ;;  %v361_v14 = vld [vmem:[#allocation2] sm:$0xff] }
   0x9   :  { %v367_v15 = vld [vmem:[%s527_s3 + $0x10] sm:$0xff]  ;;  %v43_v16 = vld [vmem:[%s524_s0] sm:$0xf]  ;;  %v366_v17 = vld [vmem:[%s527_s3 + $0x8] sm:$0xff] }
   0xa   :  { %v92_v7 = vand.u32 %v90_v3, %v79_v5  ;;  %v365_v18 = vld [vmem:[%s527_s3] sm:$0xff]  ;;  %v380_v19 = vld [vmem:[%s529_s5 + $0x38] sm:$0xff]  ;;  %v379_v20 = vld [vmem:[%s529_s5 + $0x30] sm:$0xff] }
   0xb   :  { %178 = vmatpush.bf16.msra.mxu1 %v371_v6  ;;  %260 = vmatpush.bf16.msra.mxu2 %v380_v19  ;;  %v378_v21 = vld [vmem:[%s529_s5 + $0x28] sm:$0xff]  ;;  %v377_v22 = vld [vmem:[%s529_s5 + $0x20] sm:$0xff]  ;;  %v376_v23 = vld [vmem:[%s529_s5 + $0x18] sm:$0xff] }
   0xc   :  { %97 = vmatpush.bf16.msra.mxu0 %v92_v7  ;;  %v375_v24 = vld [vmem:[%s529_s5 + $0x10] sm:$0xff]  ;;  %v385_v25 = vld [vmem:[%s526_s2] ss:$0 sm:$0xff]  ;;  %v374_v31 = vld [vmem:[%s529_s5 + $0x8] sm:$0xff] }
   0xd   :  { %v373_v32 = vld [vmem:[%s529_s5] sm:$0xff] }
   0xe   :  { %v386_v33 = vld [vmem:[%s528_s4] ss:$0 sm:$0xff] }
   0xf   :  { %179 = vmatpush.bf16.msra.mxu1 %v370_v9  ;;  %261 = vmatpush.bf16.msra.mxu2 %v379_v20  ;;  %v387_v39 = vld [vmem:[%s530_s6] ss:$0 sm:$0xff] }
  0x10   :  { %98 = vmatpush.bf16.msra.mxu0 %v364_v8 }
  0x13   :  { %180 = vmatpush.bf16.msra.mxu1 %v369_v11  ;;  %262 = vmatpush.bf16.msra.mxu2 %v378_v21 }
  0x14   :  { %99 = vmatpush.bf16.msra.mxu0 %v363_v10 }
  0x17   :  { %181 = vmatpush.bf16.msra.mxu1 %v368_v13  ;;  %263 = vmatpush.bf16.msra.mxu2 %v377_v22 }
  0x18   :  { %100 = vmatpush.bf16.msra.mxu0 %v362_v12 }
  0x1b   :  { %182 = vmatpush.bf16.msra.mxu1 %v367_v15  ;;  %264 = vmatpush.bf16.msra.mxu2 %v376_v23 }
  0x1c   :  { %101 = vmatpush.bf16.msra.mxu0 %v361_v14 }
  0x1f   :  { %296 = vmatmul.msk.bf16.vlgmr.msra.gmra.mxu0 %vm84_vm1, %v43_v16  ;;  %183 = vmatpush.bf16.msra.mxu1 %v366_v17 }
  0x20   :  { %265 = vmatpush.bf16.msra.mxu2 %v375_v24 }
  0x23   :  { %184 = vmatpush.bf16.msra.mxu1 %v365_v18 }
  0x24   :  { %266 = vmatpush.bf16.msra.mxu2 %v374_v31 }
  0x28   :  { %267 = vmatpush.bf16.msra.mxu2 %v373_v32 }
  0x9c   :  { %v103_v26 = vpop.f32.mrf.mxu0 }
  0x9d   :  { %v104_v27 = vadd.f32 %v385_v25, %v103_v26 }
  0x9f   :  { %v107_v28 = vmax.f32 %v104_v27, 0.0 }
  0xa1   :  { %v108_v29 = vpack.c.bf16 %v107_v28, %v107_v28 }
  0xa3   :  { %185 = vmatmul.bf16.vlgmr.msra.gmra.mxu1 %v108_v29 }
  0xa4   :  { %v105_v30 = vpop.f32.mrf.mxu0 }
 0x120   :  { %v186_v34 = vpop.f32.mrf.mxu1 }
 0x121   :  { %v187_v35 = vadd.f32 %v386_v33, %v186_v34 }
 0x123   :  { %v190_v36 = vmax.f32 %v187_v35, 0.0 }
 0x125   :  { %v191_v37 = vpack.c.bf16 %v190_v36, %v190_v36 }
 0x127   :  { %268 = vmatmul.bf16.vlgmr.msra.gmra.mxu2 %v191_v37 }
 0x128   :  { %v188_v38 = vpop.f32.mrf.mxu1 }
 0x1aa   :  { %v269_v40 = vpop.f32.mrf.mxu2 }
 0x1ab   :  { %v270_v41 = vadd.f32 %v387_v39, %v269_v40 }
 0x1ad   :  { %274 = vst.msk [vmem:[%s531_s7] sm:$0xff] %vm273_vm2, %v270_v41 }
 0x1b2   :  { %v271_v42 = vpop.f32.mrf.mxu2 }
 0x1b3   :  { %279 = vsyncpa [#allocation3], 1 }

</bundles_post_ra>
